<compile_context>
chip_gen: v6e
topology: v6e:2x2x1
jax: 0.10.0
libtpu: 0.0.40
codegen_flags: <defaults>
</compile_context>

<pallas_src>
import functools

import jax
import jax.numpy as jnp
from jax import lax
from jax.experimental import pallas as pl
from jax.experimental.pallas import tpu as pltpu
import numpy as np

_LANE = 128
_NEG_BIG = -1e30


def _round_up(x, m):
    return (x + m - 1) // m * m


def _pick_tile_m(na, ncp):
    # Keep one [TILE_M, Ncp] f32 temporary <= ~4 MiB so the handful of live
    # row-strip temporaries plus the resident [Dp, Ncp] RHS fit the default
    # scoped-VMEM limit on every generation (16 MiB v5e, 32 MiB v6e/v7x).
    cap = (4 * 1024 * 1024) // (ncp * 4)
    cap = max(8, (cap // 8) * 8)
    cap = min(cap, 256)
    return int(min(_round_up(na, 8), cap))


def _supcon_rows(logits, pos_f, valid_offdiag, scale):
    """Shared per-row-strip math.

    logits: [TM, NcP] f32, pad columns already forced to -1e30, diagonal still
    present (exactly as in the reference module).  Returns [TM, 1] f32 loss.
    """
    logits_max = jnp.max(logits, axis=1, keepdims=True)
    logits = logits - logits_max
    exp_logits = jnp.where(valid_offdiag, jnp.exp(logits), 0.0)
    log_prob = logits - jnp.log(jnp.sum(exp_logits, axis=1, keepdims=True) + 1e-8)
    # NOTE: this second row-max subtraction is part of the given PyTorch
    # module's forward (it is not in canonical SupConLoss); kept for semantics.
    log_prob = log_prob - jnp.max(log_prob, axis=1, keepdims=True)
    mask = jnp.where(valid_offdiag, pos_f, 0.0)
    mask_pos_pairs = jnp.sum(mask, axis=1, keepdims=True)
    mask_pos_pairs = jnp.where(mask_pos_pairs < 1e-6, 1.0, mask_pos_pairs)
    mean_log_prob_pos = (jnp.sum(mask * log_prob, axis=1, keepdims=True)
                         / mask_pos_pairs)
    return (-scale) * mean_log_prob_pos


def _label_kernel(row_lab_ref, col_lab_ref, anchor_ref, contrast_t_ref, out_ref,
                  *, temperature, base_temperature, nc_real):
    i = pl.program_id(0)
    a = anchor_ref[...]                                   # [TM, Dp]  (input dtype)
    ct = contrast_t_ref[...]                              # [Dp, NcP] (resident)
    logits = jnp.dot(a, ct, preferred_element_type=jnp.float32) / temperature
    tm, ncp = logits.shape
    col = lax.broadcasted_iota(jnp.int32, (tm, ncp), 1)
    grow = i * tm + lax.broadcasted_iota(jnp.int32, (tm, ncp), 0)  # GLOBAL row idx
    col_valid = col < nc_real
    valid_offdiag = jnp.logical_and(col_valid, grow != col)
    logits = jnp.where(col_valid, logits, _NEG_BIG)
    # Positive-pair mask rebuilt in-kernel from tiny label vectors.
    pos_f = (row_lab_ref[...] == col_lab_ref[...]).astype(jnp.float32)
    out_ref[...] = _supcon_rows(logits, pos_f, valid_offdiag,
                                temperature / base_temperature)


def _mask_kernel(mask_ref, anchor_ref, contrast_t_ref, out_ref,
                 *, temperature, base_temperature, nc_real):
    i = pl.program_id(0)
    a = anchor_ref[...]
    ct = contrast_t_ref[...]
    logits = jnp.dot(a, ct, preferred_element_type=jnp.float32) / temperature
    tm, ncp = logits.shape
    col = lax.broadcasted_iota(jnp.int32, (tm, ncp), 1)
    grow = i * tm + lax.broadcasted_iota(jnp.int32, (tm, ncp), 0)
    col_valid = col < nc_real
    valid_offdiag = jnp.logical_and(col_valid, grow != col)
    logits = jnp.where(col_valid, logits, _NEG_BIG)
    out_ref[...] = _supcon_rows(logits, mask_ref[...].astype(jnp.float32),
                                valid_offdiag, temperature / base_temperature)


def supcon_loss(features, labels=None, mask=None, *,
                temperature=1.0, contrast_mode='all', base_temperature=1.0):
    """JAX/Pallas equivalent of SupConLoss.forward."""
    if features.ndim < 3:
        raise ValueError('`features` needs to be [bsz, n_views, ...], '
                         'at least 3 dimensions are required')
    if features.ndim > 3:
        features = features.reshape(features.shape[0], features.shape[1], -1)

    bsz, n_views, dim = features.shape
    if labels is not None and mask is not None:
        raise ValueError('Cannot define both `labels` and `mask`')

    # torch.cat(torch.unbind(features, dim=1), dim=0): view-major concat.
    contrast_feature = jnp.concatenate(
        [features[:, v] for v in range(n_views)], axis=0)          # [Nc, D]

    if contrast_mode == 'one':
        anchor_feature = features[:, 0]
        anchor_count = 1
    elif contrast_mode == 'all':
        anchor_feature = contrast_feature
        anchor_count = n_views
    else:
        raise ValueError('Unknown mode: {}'.format(contrast_mode))

    na = bsz * anchor_count
    nc = bsz * n_views

    ncp = _round_up(nc, _LANE)
    dp = _round_up(dim, _LANE)
    tile_m = _pick_tile_m(na, ncp)
    nap = _round_up(na, tile_m)
    grid = (nap // tile_m,)

    # Zero-padding: extra D columns contribute 0 to the dot, pad anchor rows
    # are sliced off before the mean, pad contrast columns get -1e30 logits
    # and a zero mask inside the kernel.
    anchor_p = jnp.pad(anchor_feature, ((0, nap - na), (0, dp - dim)))
    contrast_t = jnp.pad(contrast_feature.T, ((0, dp - dim), (0, ncp - nc)))

    anchor_spec = pl.BlockSpec((tile_m, dp), lambda i: (i, 0))
    contrast_spec = pl.BlockSpec((dp, ncp), lambda i: (0, 0))      # stays resident
    out_spec = pl.BlockSpec((tile_m, 1), lambda i: (i, 0))
    compiler_params = pltpu.CompilerParams(dimension_semantics=("parallel",))
    itemsize = jnp.dtype(features.dtype).itemsize
    base_bytes = (nap * dp + dp * ncp) * itemsize + nap * 4

    if mask is None:
        if labels is None:
            base_ids = jnp.arange(bsz, dtype=jnp.int32)
        else:
            labels = jnp.asarray(labels).reshape(-1)
            if labels.shape[0] != bsz:
                raise ValueError('Num of labels does not match num of features')
            base_ids = labels.astype(jnp.int32)
        row_ids = jnp.pad(jnp.tile(base_ids, anchor_count), (0, nap - na))
        col_ids = jnp.pad(jnp.tile(base_ids, n_views), (0, ncp - nc))
        row_ids = row_ids.reshape(nap, 1)
        col_ids = col_ids.reshape(1, ncp)

        kernel = functools.partial(_label_kernel,
                                   temperature=float(temperature),
                                   base_temperature=float(base_temperature),
                                   nc_real=nc)
        cost = pl.CostEstimate(flops=2 * nap * ncp * dp,
                               transcendentals=nap * ncp,
                               bytes_accessed=base_bytes + (nap + ncp) * 4)
        loss_rows = pl.pallas_call(
            kernel,
            out_shape=jax.ShapeDtypeStruct((nap, 1), jnp.float32),
            grid=grid,
            in_specs=[pl.BlockSpec((tile_m, 1), lambda i: (i, 0)),
                      pl.BlockSpec((1, ncp), lambda i: (0, 0)),
                      anchor_spec, contrast_spec],
            out_specs=out_spec,
            compiler_params=compiler_params,
            cost_estimate=cost,
        )(row_ids, col_ids, anchor_p, contrast_t)
    else:
        # TODO(synk): explicit user-supplied masks cannot be expressed as a
        # label compare; this path materializes the tiled mask (row-blocked).
        mask = jnp.asarray(mask, dtype=jnp.float32)
        big_mask = jnp.pad(jnp.tile(mask, (anchor_count, n_views)),
                           ((0, nap - na), (0, ncp - nc)))
        kernel = functools.partial(_mask_kernel,
                                   temperature=float(temperature),
                                   base_temperature=float(base_temperature),
                                   nc_real=nc)
        cost = pl.CostEstimate(flops=2 * nap * ncp * dp,
                               transcendentals=nap * ncp,
                               bytes_accessed=base_bytes + nap * ncp * 4)
        loss_rows = pl.pallas_call(
            kernel,
            out_shape=jax.ShapeDtypeStruct((nap, 1), jnp.float32),
            grid=grid,
            in_specs=[pl.BlockSpec((tile_m, ncp), lambda i: (i, 0)),
                      anchor_spec, contrast_spec],
            out_specs=out_spec,
            compiler_params=compiler_params,
            cost_estimate=cost,
        )(big_mask, anchor_p, contrast_t)

    # loss.view(anchor_count, batch_size).mean() == mean over all Na anchors.
    return jnp.mean(loss_rows[:na, 0])


def _supcon_loss_ref(features, labels=None, mask=None, temperature=1.0,
                     contrast_mode='all', base_temperature=1.0):
    """Pure-JAX reference mirroring the PyTorch module line-by-line."""
    if features.ndim > 3:
        features = features.reshape(features.shape[0], features.shape[1], -1)
    bsz = features.shape[0]
    if labels is None and mask is None:
        mask = jnp.eye(bsz, dtype=jnp.float32)
    elif labels is not None:
        labels = jnp.asarray(labels).reshape(-1, 1)
        mask = (labels == labels.T).astype(jnp.float32)
    else:
        mask = jnp.asarray(mask, dtype=jnp.float32)
    contrast_count = features.shape[1]
    contrast = jnp.concatenate([features[:, v] for v in range(contrast_count)], axis=0)
    if contrast_mode == 'one':
        anchor = features[:, 0]
        anchor_count = 1
    else:
        anchor = contrast
        anchor_count = contrast_count
    logits = (anchor @ contrast.T) / temperature
    logits = logits - jnp.max(logits, axis=1, keepdims=True)
    mask = jnp.tile(mask, (anchor_count, contrast_count))
    n = bsz * anchor_count
    logits_mask = jnp.ones_like(mask).at[jnp.arange(n), jnp.arange(n)].set(0.0)
    mask = mask * logits_mask
    exp_logits = jnp.exp(logits) * logits_mask
    log_prob = logits - jnp.log(exp_logits.sum(1, keepdims=True) + 1e-8)
    log_prob = log_prob - jnp.max(log_prob, axis=1, keepdims=True)
    mpp = mask.sum(1)
    mpp = jnp.where(mpp < 1e-6, 1.0, mpp)
    mean_log_prob_pos = (mask * log_prob).sum(1) / mpp
    loss = -(temperature / base_temperature) * mean_log_prob_pos
    return loss.reshape(anchor_count, bsz).mean()


if __name__ == "__main__":
    key = jax.random.PRNGKey(0)
    # features: [bsz=4, n_views=2, dim=32]
    features = jax.random.normal(key, (4, 2, 32), dtype=jnp.float32)
    labels = jnp.array([0, 1, 0, 1], dtype=jnp.int32)
    user_mask = (labels[:, None] == labels[None, :]).astype(jnp.float32)

    cases = [
        dict(labels=None, mask=None, temperature=1.0,
             contrast_mode='all', base_temperature=1.0),
        dict(labels=labels, mask=None, temperature=0.5,
             contrast_mode='all', base_temperature=1.0),
        dict(labels=None, mask=user_mask, temperature=1.0,
             contrast_mode='one', base_temperature=1.0),
    ]
    for cfg in cases:
        out = jax.block_until_ready(
            supcon_loss(features, cfg['labels'], cfg['mask'],
                        temperature=cfg['temperature'],
                        contrast_mode=cfg['contrast_mode'],
                        base_temperature=cfg['base_temperature']))
        ref = jax.block_until_ready(
            _supcon_loss_ref(features, cfg['labels'], cfg['mask'],
                             temperature=cfg['temperature'],
                             contrast_mode=cfg['contrast_mode'],
                             base_temperature=cfg['base_temperature']))
        np.testing.assert_allclose(np.asarray(out), np.asarray(ref),
                                   rtol=1e-4, atol=1e-5)

    print("KERNEL_OK")
</pallas_src>

<mosaic_0001>
module attributes {stable_mosaic.version = 11 : i64} {
  func.func @_label_kernel(%arg0: i32, %arg1: memref<8x1xi32, #tpu.memory_space<vmem>>, %arg2: memref<1x128xi32, #tpu.memory_space<vmem>>, %arg3: memref<8x128xf32, #tpu.memory_space<vmem>>, %arg4: memref<128x128xf32, #tpu.memory_space<vmem>>, %arg5: memref<8x1xf32, #tpu.memory_space<vmem>>) attributes {dimension_semantics = [#tpu.dimension_semantics<parallel>], iteration_bounds = array<i64: 1>, scalar_prefetch = 0 : i64, scratch_operands = 0 : i64, tpu.core_type = #tpu.core_type<tc>, window_params = [{transform_indices = @transform_0, window_bounds = array<i64: 8, 1>}, {pipeline_mode = #tpu.pipeline_mode<synchronous>, transform_indices = @transform_1, window_bounds = array<i64: 1, 128>}, {transform_indices = @transform_2, window_bounds = array<i64: 8, 128>}, {pipeline_mode = #tpu.pipeline_mode<synchronous>, transform_indices = @transform_3, window_bounds = array<i64: 128, 128>}, {transform_indices = @transform_4, window_bounds = array<i64: 8, 1>}]} {
    %c0 = arith.constant 0 : index
    %c0_0 = arith.constant 0 : index
    %0 = vector.load %arg3[%c0, %c0_0] : memref<8x128xf32, #tpu.memory_space<vmem>>, vector<8x128xf32>
    %c0_1 = arith.constant 0 : index
    %c0_2 = arith.constant 0 : index
    %1 = vector.load %arg4[%c0_1, %c0_2] : memref<128x128xf32, #tpu.memory_space<vmem>>, vector<128x128xf32>
    %cst = arith.constant dense<0.000000e+00> : vector<8x128xf32>
    %2 = tpu.matmul %0, %1, %cst {dimension_numbers = #tpu.dot_dimension_numbers<[1], [0], [0], [1], [0, 0, 1, 1], [], []>} : vector<8x128xf32>, vector<128x128xf32>, vector<8x128xf32> -> vector<8x128xf32>
    %cst_3 = arith.constant 1.000000e+00 : f32
    %3 = vector.broadcast %cst_3 : f32 to vector<8x128xf32>
    %4 = arith.divf %2, %3 : vector<8x128xf32>
    %5 = tpu.iota {dimensions = array<i32: 1>} : vector<8x128xi32>
    %c8_i32 = arith.constant 8 : i32
    %6 = arith.muli %arg0, %c8_i32 : i32
    %7 = tpu.iota {dimensions = array<i32: 0>} : vector<8x128xi32>
    %8 = vector.broadcast %6 : i32 to vector<8x128xi32>
    %9 = arith.addi %8, %7 : vector<8x128xi32>
    %c8_i32_4 = arith.constant 8 : i32
    %10 = vector.broadcast %c8_i32_4 : i32 to vector<8x128xi32>
    %11 = arith.cmpi slt, %5, %10 : vector<8x128xi32>
    %12 = arith.cmpi ne, %9, %5 : vector<8x128xi32>
    %13 = arith.andi %11, %12 : vector<8x128xi1>
    %cst_5 = arith.constant -1.000000e+30 : f32
    %14 = vector.broadcast %cst_5 : f32 to vector<8x128xf32>
    %15 = arith.select %11, %4, %14 : vector<8x128xi1>, vector<8x128xf32>
    %c0_6 = arith.constant 0 : index
    %c0_7 = arith.constant 0 : index
    %16 = vector.load %arg1[%c0_6, %c0_7] : memref<8x1xi32, #tpu.memory_space<vmem>>, vector<8x1xi32>
    %c0_8 = arith.constant 0 : index
    %c0_9 = arith.constant 0 : index
    %17 = vector.load %arg2[%c0_8, %c0_9] : memref<1x128xi32, #tpu.memory_space<vmem>>, vector<1x128xi32>
    %18 = vector.broadcast %16 : vector<8x1xi32> to vector<8x128xi32>
    %19 = vector.broadcast %17 : vector<1x128xi32> to vector<8x128xi32>
    %20 = arith.cmpi eq, %18, %19 : vector<8x128xi32>
    %21 = arith.extui %20 : vector<8x128xi1> to vector<8x128xi32>
    %22 = arith.sitofp %21 : vector<8x128xi32> to vector<8x128xf32>
    %cst_10 = arith.constant dense<0xFF800000> : vector<8xf32>
    %23 = vector.multi_reduction <maximumf>, %15, %cst_10 [1] : vector<8x128xf32> to vector<8xf32>
    %24 = vector.shape_cast %23 : vector<8xf32> to vector<8x1xf32>
    %25 = vector.broadcast %24 : vector<8x1xf32> to vector<8x128xf32>
    %26 = arith.subf %15, %25 : vector<8x128xf32>
    %27 = math.exp %26 : vector<8x128xf32>
    %cst_11 = arith.constant 0.000000e+00 : f32
    %28 = vector.broadcast %cst_11 : f32 to vector<8x128xf32>
    %29 = arith.select %13, %27, %28 : vector<8x128xi1>, vector<8x128xf32>
    %cst_12 = arith.constant dense<0.000000e+00> : vector<8xf32>
    %30 = vector.multi_reduction <add>, %29, %cst_12 [1] : vector<8x128xf32> to vector<8xf32>
    %31 = vector.shape_cast %30 : vector<8xf32> to vector<8x1xf32>
    %cst_13 = arith.constant 9.99999993E-9 : f32
    %32 = vector.broadcast %cst_13 : f32 to vector<8x1xf32>
    %33 = arith.addf %31, %32 : vector<8x1xf32>
    %34 = math.log %33 : vector<8x1xf32>
    %35 = vector.broadcast %34 : vector<8x1xf32> to vector<8x128xf32>
    %36 = arith.subf %26, %35 : vector<8x128xf32>
    %cst_14 = arith.constant dense<0xFF800000> : vector<8xf32>
    %37 = vector.multi_reduction <maximumf>, %36, %cst_14 [1] : vector<8x128xf32> to vector<8xf32>
    %38 = vector.shape_cast %37 : vector<8xf32> to vector<8x1xf32>
    %39 = vector.broadcast %38 : vector<8x1xf32> to vector<8x128xf32>
    %40 = arith.subf %36, %39 : vector<8x128xf32>
    %cst_15 = arith.constant 0.000000e+00 : f32
    %41 = vector.broadcast %cst_15 : f32 to vector<8x128xf32>
    %42 = arith.select %13, %22, %41 : vector<8x128xi1>, vector<8x128xf32>
    %cst_16 = arith.constant dense<0.000000e+00> : vector<8xf32>
    %43 = vector.multi_reduction <add>, %42, %cst_16 [1] : vector<8x128xf32> to vector<8xf32>
    %44 = vector.shape_cast %43 : vector<8xf32> to vector<8x1xf32>
    %cst_17 = arith.constant 9.99999997E-7 : f32
    %45 = vector.broadcast %cst_17 : f32 to vector<8x1xf32>
    %46 = arith.cmpf olt, %44, %45 : vector<8x1xf32>
    %cst_18 = arith.constant 1.000000e+00 : f32
    %47 = vector.broadcast %cst_18 : f32 to vector<8x1xf32>
    %48 = arith.select %46, %47, %44 : vector<8x1xi1>, vector<8x1xf32>
    %49 = arith.mulf %42, %40 : vector<8x128xf32>
    %cst_19 = arith.constant dense<0.000000e+00> : vector<8xf32>
    %50 = vector.multi_reduction <add>, %49, %cst_19 [1] : vector<8x128xf32> to vector<8xf32>
    %51 = vector.shape_cast %50 : vector<8xf32> to vector<8x1xf32>
    %52 = arith.divf %51, %48 : vector<8x1xf32>
    %cst_20 = arith.constant -1.000000e+00 : f32
    %53 = vector.broadcast %cst_20 : f32 to vector<8x1xf32>
    %54 = arith.mulf %53, %52 : vector<8x1xf32>
    %c0_21 = arith.constant 0 : index
    %c0_22 = arith.constant 0 : index
    %55 = vector.load %arg5[%c0_21, %c0_22] : memref<8x1xf32, #tpu.memory_space<vmem>>, vector<8x1xf32>
    tpu.vector_store %arg5[%c0_21, %c0_22], %54 {strides = array<i32>} : memref<8x1xf32, #tpu.memory_space<vmem>>, vector<8x1xf32>,
    return
  }
  func.func @transform_0(%arg0: i32) -> (i32, i32) {
    %c0_i32 = arith.constant 0 : i32
    %c0_i32_0 = arith.constant 0 : i32
    return %arg0, %c0_i32 : i32, i32
  }
  func.func @transform_1(%arg0: i32) -> (i32, i32) {
    %c0_i32 = arith.constant 0 : i32
    %c0_i32_0 = arith.constant 0 : i32
    %c0_i32_1 = arith.constant 0 : i32
    return %c0_i32, %c0_i32_0 : i32, i32
  }
  func.func @transform_2(%arg0: i32) -> (i32, i32) {
    %c0_i32 = arith.constant 0 : i32
    %c0_i32_0 = arith.constant 0 : i32
    return %arg0, %c0_i32 : i32, i32
  }
  func.func @transform_3(%arg0: i32) -> (i32, i32) {
    %c0_i32 = arith.constant 0 : i32
    %c0_i32_0 = arith.constant 0 : i32
    %c0_i32_1 = arith.constant 0 : i32
    return %c0_i32, %c0_i32_0 : i32, i32
  }
  func.func @transform_4(%arg0: i32) -> (i32, i32) {
    %c0_i32 = arith.constant 0 : i32
    %c0_i32_0 = arith.constant 0 : i32
    return %arg0, %c0_i32 : i32, i32
  }
}

</mosaic_0001>

<bundles_post_ra>
// kernel: tpu_custom_call.1
= control target key start
LH: loop header
LB: loop body
LE: loop exit
PB: predicated region body
PF: predicated region fallthrough
CT: control target
= control target key end

     0   :  { %9 = vsyncpa [#allocation3], 0  ;;  %s264_s15 = smov [#allocation2]   ;;  %s330_s0 = inlined_call_operand.vmem [shape: s32[8,1], index: 0, kind: input, shape index: {}]   ;;  %s331_s1 = inlined_call_operand.vmem [shape: s32[1,128], index: 1, kind: input, shape index: {}]   ;;  %s332_s2 = inlined_call_operand.vmem [shape: f32[8,128], index: 2, kind: input, shape index: {}]   ;;  %s333_s3 = inlined_call_operand.hbm [shape: f32[128,128], index: 3, kind: input, shape index: {}]   ;;  %s334_s4 = inlined_call_operand.vmem [shape: f32[8,1], index: 4, kind: output, shape index: {}]  }
   0x1   :  { %s21_s16 = sshll.u32 %s264_s15, 4  ;;  %s22_s16 = int_to_ptr.vmem [resolvable:$true] %s21_s16 }
   0x2   :  { %s250_s17 = scalar_lea.vmem %s22_s16, 2048  ;;  %p255_p1 = scmp.lt.s32.totalorder %s22_s16, %s22_s16 }
   0x3   :  { %p251_p0 = scmp.ne.s32.totalorder %s22_s16, %s250_s17  ;;  %p256_p2 = scmp.lt.s32.totalorder %s250_s17, %s250_s17 }
   0x5   :  { %p257_p3 = por %p256_p2, %p255_p1 }
   0x7   :  { %p258_p4 = pnand %p257_p3, %p251_p0 }
   0x9   :  { %261 = shalt.err (!%p258_p4)
}
   0xa   :  { %s265_s18 = smov 128   ;;  %s266_s19 = smov 8  }
   0xb   :  { %27 = dma.hbm_to_vmem [thread:$0]  %s333_s3, 2048, %s22_s16, [#allocation3], %s265_s18, %s265_s18, %s266_s19  }
   0xc   :  { %262 = dma.done.wait [#allocation3], 2048  }
   0xd   :  { %263 = vsyncadd [#allocation3], 4294965248  ;;  %v267_v0 = vmov 0.0   ;;  %vm268_vm0 = vmmov 0   ;;  %v47_v1 = vld [vmem:[#allocation2 + $0x78] sm:$0xff]  ;;  %v46_v2 = vld [vmem:[#allocation2 + $0x70] sm:$0xff]  ;;  %v118_v18 = vlaneseq }
   0xe   :  { %193 = vmatprep.subr.mxu0 %v267_v0  ;;  %225 = vmatprep.mubr.msk.f32.mxu0 %vm268_vm0, %v267_v0  ;;  %v45_v3 = vld [vmem:[#allocation2 + $0x68] sm:$0xff]  ;;  %v44_v4 = vld [vmem:[#allocation2 + $0x60] sm:$0xff]  ;;  %v43_v5 = vld [vmem:[#allocation2 + $0x58] sm:$0xff]  ;;  %v269_v24 = vmov 0   ;;  %vm167_vm6 = vcmask 7168  }
   0xf   :  { %194 = vmatpush3.msra.mxu0 %v47_v1  ;;  %v42_v6 = vld [vmem:[#allocation2 + $0x50] sm:$0xff]  ;;  %v41_v7 = vld [vmem:[#allocation2 + $0x48] sm:$0xff]  ;;  %v40_v8 = vld [vmem:[#allocation2 + $0x40] sm:$0xff]  ;;  %v119_v19 = vand.u32 127, %v118_v18  ;;  %234 = vset.pattern.permute.xlu1 %v269_v24  ;;  %v122_v28 = vshrl.u32 %v118_v18, 7 }
  0x10   :  { %195 = vmatprep.subr.mxu0 %v267_v0  ;;  %v39_v9 = vld [vmem:[#allocation2 + $0x38] sm:$0xff]  ;;  %v38_v10 = vld [vmem:[#allocation2 + $0x30] sm:$0xff]  ;;  %v37_v11 = vld [vmem:[#allocation2 + $0x28] sm:$0xff]  ;;  %235 = vset.pattern.permute.xlu0 %v269_v24 }
  0x11   :  { %196 = vmatpush3.msra.mxu0 %v46_v2  ;;  %v36_v12 = vld [vmem:[#allocation2 + $0x20] sm:$0xff]  ;;  %v35_v13 = vld [vmem:[#allocation2 + $0x18] sm:$0xff]  ;;  %v34_v14 = vld [vmem:[#allocation2 + $0x10] sm:$0xff]  ;;  %vm125_vm1 = vcmp.lt.s32.totalorder %v119_v19, 8  ;;  %vm126_vm2 = vcmp.ne.s32.totalorder %v122_v28, %v119_v19 }
  0x12   :  { %197 = vmatprep.subr.mxu0 %v267_v0  ;;  %v33_v15 = vld [vmem:[#allocation2 + $0x8] sm:$0xff]  ;;  %v32_v16 = vld [vmem:[#allocation2] sm:$0xff]  ;;  %vm127_vm3 = vmand %vm125_vm1, %vm126_vm2 }
  0x13   :  { %198 = vmatpush3.msra.mxu0 %v45_v3  ;;  %v31_v17 = vld [vmem:[%s332_s2] sm:$0xff] }
  0x14   :  { %199 = vmatprep.subr.mxu0 %v267_v0  ;;  %v129_v23 = vld [vmem:[%s330_s0] sm:$0xff] }
  0x15   :  { %200 = vmatpush3.msra.mxu0 %v44_v4  ;;  %132 = vperm.xlu1 %234, %v129_v23   ;;  %v174_v31 = vld [vmem:[%s331_s1] ss:$0 sm:$0xff] }
  0x16   :  { %201 = vmatprep.subr.mxu0 %v267_v0 }
  0x17   :  { %202 = vmatpush3.msra.mxu0 %v43_v5 }
  0x18   :  { %203 = vmatprep.subr.mxu0 %v267_v0 }
  0x19   :  { %204 = vmatpush3.msra.mxu0 %v42_v6 }
  0x1a   :  { %205 = vmatprep.subr.mxu0 %v267_v0 }
  0x1b   :  { %206 = vmatpush3.msra.mxu0 %v41_v7 }
  0x1c   :  { %207 = vmatprep.subr.mxu0 %v267_v0 }
  0x1d   :  { %208 = vmatpush3.msra.mxu0 %v40_v8 }
  0x1e   :  { %209 = vmatprep.subr.mxu0 %v267_v0 }
  0x1f   :  { %210 = vmatpush3.msra.mxu0 %v39_v9 }
  0x20   :  { %211 = vmatprep.subr.mxu0 %v267_v0 }
  0x21   :  { %212 = vmatpush3.msra.mxu0 %v38_v10 }
  0x22   :  { %213 = vmatprep.subr.mxu0 %v267_v0 }
  0x23   :  { %214 = vmatpush3.msra.mxu0 %v37_v11 }
  0x24   :  { %215 = vmatprep.subr.mxu0 %v267_v0 }
  0x25   :  { %216 = vmatpush3.msra.mxu0 %v36_v12 }
  0x26   :  { %217 = vmatprep.subr.mxu0 %v267_v0 }
  0x27   :  { %218 = vmatpush3.msra.mxu0 %v35_v13 }
  0x28   :  { %219 = vmatprep.subr.mxu0 %v267_v0 }
  0x29   :  { %220 = vmatpush3.msra.mxu0 %v34_v14 }
  0x2a   :  { %221 = vmatprep.subr.mxu0 %v267_v0 }
  0x2b   :  { %222 = vmatpush3.msra.mxu0 %v33_v15 }
  0x2c   :  { %223 = vmatprep.subr.mxu0 %v267_v0 }
  0x2d   :  { %224 = vmatpush3.msra.mxu0 %v32_v16 }
  0x2e   :  { %226 = vmatmul.mubr.f32.vlgmr.msra.gmra.mxu0 %v31_v17 }
  0x90   :  { %v133_v32 = vpop.permute.xlu1 %132 }
  0x91   :  { %vm138_vm4 = vcmp.eq.s32.totalorder %v133_v32, %v174_v31 }
  0x92   :  { %v175_v33 = vsel %vm138_vm4, 1.0, %v267_v0 }
  0x93   :  { %v156_v34 = vsel %vm127_vm3, %v175_v33, 0.0 }
  0xee   :  { %v114_v20 = vpop.f32.mrf.mxu0 }
  0xef   :  { %v128_v21 = vsel %vm125_vm1, %v114_v20, -1e+30 }
  0xf0   :  { %141 = vmax.xlane.f32.xlu0 %v128_v21  ;;  %v227_v22 = vpop.f32.mrf.mxu0 }
 0x179   :  { %v142_v25 = vpop.xlane.xlu0 %141 }
 0x17a   :  { %v143_v26 = vsub.f32 %v128_v21, %v142_v25 }
 0x17c   :  { %v144_v27 = vmul.f32 1.442695, %v143_v26 }
 0x17e   :  { %236 = vpow2.f32 %v144_v27 }
 0x18b   :  { %v237_v29 = vpop.eup %236 }
 0x18c   :  { %v146_v30 = vsel %vm127_vm3, %v237_v29, 0.0 }
 0x18d   :  { %147 = vadd.xlane.f32.xlu0 %v146_v30 }
 0x191   :  { %157 = vadd.xlane.f32.xlu0 %v156_v34 }
 0x216   :  { %v148_v35 = vpop.xlane.xlu0 %147 }
 0x217   :  { %v149_v36 = vadd.f32 1e-08, %v148_v35 }
 0x219   :  { %238 = vlog2.f32 %v149_v36 }
 0x21a   :  { %v158_v43 = vpop.xlane.xlu0 %157 }
 0x21b   :  { %vm159_vm5 = vcmp.lt.f32.partialorder %v158_v43, 1e-06 }
 0x21c   :  { %v160_v44 = vsel %vm159_vm5, 1.0, %v158_v43 }
 0x21d   :  { %240 = vrcp.f32 %v160_v44 }
 0x226   :  { %v239_v37 = vpop.eup %238 }
 0x227   :  { %v151_v38 = vmul.f32 0.6931472, %v239_v37 }
 0x229   :  { %v152_v39 = vsub.f32 %v143_v26, %v151_v38 }
 0x22a   :  { %v241_v45 = vpop.eup %240 }
 0x22b   :  { %153 = vmax.xlane.f32.xlu1 %v152_v39 }
 0x2b4   :  { %v154_v40 = vpop.xlane.xlu1 %153 }
 0x2b5   :  { %v155_v41 = vsub.f32 %v152_v39, %v154_v40 }
 0x2b7   :  { %v161_v42 = vmul.f32 %v156_v34, %v155_v41 }
 0x2b9   :  { %162 = vadd.xlane.f32.xlu0 %v161_v42 }
 0x342   :  { %v163_v46 = vpop.xlane.xlu0 %162 }
 0x343   :  { %v165_v47 = vmul.f32 %v241_v45, %v163_v46 }
 0x345   :  { %v166_v48 = vmul.f32 -1.0, %v165_v47 }
 0x347   :  { %168 = vst.msk [vmem:[%s334_s4] sm:$0xff] %vm167_vm6, %v166_v48 }
 0x348   :  { %173 = vsyncpa [#allocation3], 1 }

</bundles_post_ra>
